<compile_context>
chip_gen: v7x
topology: tpu7x:2x2x1
jax: 0.10.0
libtpu: 0.0.40
codegen_flags: <defaults>
</compile_context>

<pallas_src>
import functools

import jax
import jax.numpy as jnp
from jax import lax
from jax.experimental import pallas as pl
from jax.experimental.pallas import tpu as pltpu

BN_EPS = 1e-5  # nn.BatchNorm2d default

# 3x3 tap offsets (dh, dw), centre tap FIRST (aligned residual / row-block 0).
TAPS = ((0, 0),
        (-1, -1), (-1, 0), (-1, 1),
        (0, -1), (0, 1),
        (1, -1), (1, 0), (1, 1))


def se_basic_block_kernel(x_ref, w_ref, gamma_ref, beta_ref, o_ref, *, H, W):
    """Fused conv3x3 + BN(batch stats) + ReLU + residual + ReLU.

    x_ref:     (N, Cin, H*W)   f32 input, natural layout (columns ordered (h, w)).
    w_ref:     (Cout, 9*Cin)   bf16 conv weights, columns ordered (tap, ci), centre tap first.
    gamma_ref: (Cout, 1)       f32 bn1.weight
    beta_ref:  (Cout, 1)       f32 bn1.bias
    o_ref:     (N, Cout, H*W)  output, same layout as the input (lane-dense store).
    """
    n_img, cin, hw = x_ref.shape
    w_mat = w_ref[...]                                        # (Cout, 9*Cin) bf16

    # Boundary masks from a lane iota over the flattened (h, w) column axis.
    col = lax.broadcasted_iota(jnp.int32, (1, hw), 1)
    if (W & (W - 1)) == 0:
        wi = jnp.bitwise_and(col, W - 1)                      # w index (power-of-2 fast path)
    else:
        wi = col % W
    ok = {
        -1: {"h": col >= W,            "w": wi > 0},          # source h-1 / w-1 exists
        1:  {"h": col < (H - 1) * W,   "w": wi < (W - 1)},    # source h+1 / w+1 exists
    }

    inv_m = 1.0 / float(n_img * hw)

    # ---- conv3x3 as one K=9*Cin MXU matmul per image (taps synthesized in VMEM) ----
    accs = []
    for n in range(n_img):
        x_n = x_ref[n]                                        # (Cin, HW) f32 — also the residual
        xb = x_n.astype(jnp.bfloat16)                         # bf16 MXU operand
        taps = []
        for (dh, dw) in TAPS:
            if dh == 0 and dw == 0:
                taps.append(xb)                               # centre tap == x itself
                continue
            t = jnp.roll(xb, -(dh * W + dw), axis=-1)         # shifted view of the image
            mask = None
            if dh != 0:
                mask = ok[dh]["h"]
            if dw != 0:
                mask = ok[dw]["w"] if mask is None else jnp.logical_and(mask, ok[dw]["w"])
            taps.append(jnp.where(mask, t, jnp.zeros_like(t)))
        p_n = jnp.concatenate(taps, axis=0)                   # (9*Cin, HW) bf16
        accs.append(jnp.dot(w_mat, p_n, preferred_element_type=jnp.float32))  # (Cout, HW) f32

    # ---- BatchNorm2d (training-mode biased batch stats), two-pass variance ----
    # TODO(synk): at real scale move these lane reductions onto the MXU (dot with a ones
    # vector / per-tile partial accumulation) so the XLU slot stays free for the rolls.
    s = accs[0].sum(axis=1, keepdims=True)
    for n in range(1, n_img):
        s = s + accs[n].sum(axis=1, keepdims=True)
    mean = s * inv_m                                          # (Cout, 1)
    ss = ((accs[0] - mean) ** 2).sum(axis=1, keepdims=True)
    for n in range(1, n_img):
        ss = ss + ((accs[n] - mean) ** 2).sum(axis=1, keepdims=True)
    var = ss * inv_m
    scale = gamma_ref[...] * lax.rsqrt(var + BN_EPS)          # rsqrt -> EUP slot
    shift = beta_ref[...] - mean * scale

    # ---- affine + ReLU + residual (exact f32 x) + ReLU, lane-dense store ----
    for n in range(n_img):
        bn_relu = jnp.maximum(accs[n] * scale + shift, 0.0)
        out_n = jnp.maximum(bn_relu + x_ref[n], 0.0)
        o_ref[n] = out_n.astype(o_ref.dtype)


def se_basic_block(x_nchw, w_oihw, gamma, beta):
    """x_nchw: (N, C, H, W) f32; w_oihw: (Cout, Cin, 3, 3); gamma/beta: (Cout,)."""
    N, C, H, W = x_nchw.shape
    Cout = w_oihw.shape[0]
    assert Cout == C, "stride=1 / downsample=None requires inplanes == planes"
    HW = H * W

    # --- glue (free reshape + tiny weight repack; no im2col, no transposes) ---------
    x3 = x_nchw.reshape(N, C, HW)                                        # f32, natural layout
    w2 = jnp.concatenate([w_oihw[:, :, dh + 1, dw + 1] for (dh, dw) in TAPS],
                         axis=1).astype(jnp.bfloat16)                    # (Cout, 9*Cin), tap-major
    gamma2 = gamma.reshape(Cout, 1).astype(jnp.float32)
    beta2 = beta.reshape(Cout, 1).astype(jnp.float32)

    kernel = functools.partial(se_basic_block_kernel, H=H, W=W)

    flops = 2 * Cout * (9 * C) * (N * HW) + 10 * Cout * N * HW
    bytes_accessed = (N * C * HW * 4            # x read (f32)
                      + N * Cout * HW * 4       # out write (f32)
                      + Cout * 9 * C * 2        # weights (bf16)
                      + 2 * Cout * 4)           # gamma/beta

    out3 = pl.pallas_call(
        kernel,
        out_shape=jax.ShapeDtypeStruct((N, Cout, HW), x_nchw.dtype),
        grid=(1,),  # toy problem: one block; BN needs global batch stats anyway
        in_specs=[
            pl.BlockSpec((N, C, HW), lambda i: (0, 0, 0)),
            pl.BlockSpec((Cout, 9 * C), lambda i: (0, 0)),
            pl.BlockSpec((Cout, 1), lambda i: (0, 0)),
            pl.BlockSpec((Cout, 1), lambda i: (0, 0)),
        ],
        out_specs=pl.BlockSpec((N, Cout, HW), lambda i: (0, 0, 0)),
        compiler_params=pltpu.CompilerParams(
            dimension_semantics=("arbitrary",)),
        cost_estimate=pl.CostEstimate(
            flops=flops, transcendentals=Cout, bytes_accessed=bytes_accessed),
    )(x3, w2, gamma2, beta2)

    return out3.reshape(N, Cout, H, W)          # pure reshape — no transpose needed


def reference(x, w, gamma, beta):
    """Pure-JAX reference of SEBasicBlock.forward (training-mode BN)."""
    out = lax.conv_general_dilated(
        x, w, window_strides=(1, 1), padding=((1, 1), (1, 1)),
        dimension_numbers=("NCHW", "OIHW", "NCHW"))
    mean = jnp.mean(out, axis=(0, 2, 3), keepdims=True)
    var = jnp.mean((out - mean) ** 2, axis=(0, 2, 3), keepdims=True)
    out = (out - mean) * lax.rsqrt(var + BN_EPS)
    out = out * gamma.reshape(1, -1, 1, 1) + beta.reshape(1, -1, 1, 1)
    out = jnp.maximum(out, 0.0)
    out = out + x
    return jnp.maximum(out, 0.0)


if __name__ == "__main__":
    key = jax.random.PRNGKey(0)
    k_x, k_w, k_g, k_b = jax.random.split(key, 4)

    N, C, H, W = 2, 4, 16, 16          # inplanes == planes == 4, stride=1, downsample=None
    x = jax.random.normal(k_x, (N, C, H, W), dtype=jnp.float32)
    w = jax.random.normal(k_w, (C, C, 3, 3), dtype=jnp.float32) * 0.1    # conv1 weight (no bias)
    gamma = 1.0 + 0.1 * jax.random.normal(k_g, (C,), dtype=jnp.float32)  # bn1 weight
    beta = 0.1 * jax.random.normal(k_b, (C,), dtype=jnp.float32)         # bn1 bias

    out = se_basic_block(x, w, gamma, beta)
    out = jax.block_until_ready(out)

    ref = reference(x, w, gamma, beta)
    assert out.shape == (N, C, H, W)
    # bf16 MXU operands -> ~1e-2-level quantization of the conv path (residual stays f32).
    assert jnp.allclose(out, ref, atol=5e-2, rtol=5e-2), \
        f"max abs err = {jnp.max(jnp.abs(out - ref))}"

    # TODO(synk): nn.BatchNorm2d training also updates running_mean/running_var;
    # that side effect is not reproduced here (forward output is identical).
    print("KERNEL_OK")
</pallas_src>

<mosaic_0001>
module attributes {stable_mosaic.version = 11 : i64} {
  func.func @se_basic_block_kernel(%arg0: i32, %arg1: memref<2x4x256xf32, #tpu.memory_space<vmem>>, %arg2: memref<4x36xbf16, #tpu.memory_space<vmem>>, %arg3: memref<4x1xf32, #tpu.memory_space<vmem>>, %arg4: memref<4x1xf32, #tpu.memory_space<vmem>>, %arg5: memref<2x4x256xf32, #tpu.memory_space<vmem>>) attributes {dimension_semantics = [#tpu.dimension_semantics<arbitrary>], iteration_bounds = array<i64: 1>, scalar_prefetch = 0 : i64, scratch_operands = 0 : i64, tpu.core_type = #tpu.core_type<tc>, window_params = [{pipeline_mode = #tpu.pipeline_mode<synchronous>, transform_indices = @transform_0, window_bounds = array<i64: 2, 4, 256>}, {pipeline_mode = #tpu.pipeline_mode<synchronous>, transform_indices = @transform_1, window_bounds = array<i64: 4, 36>}, {pipeline_mode = #tpu.pipeline_mode<synchronous>, transform_indices = @transform_2, window_bounds = array<i64: 4, 1>}, {pipeline_mode = #tpu.pipeline_mode<synchronous>, transform_indices = @transform_3, window_bounds = array<i64: 4, 1>}, {pipeline_mode = #tpu.pipeline_mode<synchronous>, transform_indices = @transform_4, window_bounds = array<i64: 2, 4, 256>}]} {
    %c0 = arith.constant 0 : index
    %c0_0 = arith.constant 0 : index
    %0 = vector.load %arg2[%c0, %c0_0] : memref<4x36xbf16, #tpu.memory_space<vmem>>, vector<4x36xbf16>
    %1 = tpu.iota {dimensions = array<i32: 1>} : vector<1x256xi32>
    %c15_i32 = arith.constant 15 : i32
    %2 = vector.broadcast %c15_i32 : i32 to vector<1x256xi32>
    %3 = arith.andi %1, %2 : vector<1x256xi32>
    %c16_i32 = arith.constant 16 : i32
    %4 = vector.broadcast %c16_i32 : i32 to vector<1x256xi32>
    %5 = arith.cmpi sge, %1, %4 : vector<1x256xi32>
    %c0_i32 = arith.constant 0 : i32
    %6 = vector.broadcast %c0_i32 : i32 to vector<1x256xi32>
    %7 = arith.cmpi sgt, %3, %6 : vector<1x256xi32>
    %c240_i32 = arith.constant 240 : i32
    %8 = vector.broadcast %c240_i32 : i32 to vector<1x256xi32>
    %9 = arith.cmpi slt, %1, %8 : vector<1x256xi32>
    %c15_i32_1 = arith.constant 15 : i32
    %10 = vector.broadcast %c15_i32_1 : i32 to vector<1x256xi32>
    %11 = arith.cmpi slt, %3, %10 : vector<1x256xi32>
    %c0_2 = arith.constant 0 : index
    %c0_3 = arith.constant 0 : index
    %c0_4 = arith.constant 0 : index
    %12 = vector.load %arg1[%c0_2, %c0_3, %c0_4] : memref<2x4x256xf32, #tpu.memory_space<vmem>>, vector<1x4x256xf32>
    %13 = vector.shape_cast %12 : vector<1x4x256xf32> to vector<4x256xf32>
    %14 = arith.truncf %13 : vector<4x256xf32> to vector<4x256xbf16>
    %15 = vector.extract_strided_slice %14 {offsets = [0, 239], sizes = [4, 17], strides = [1, 1]} : vector<4x256xbf16> to vector<4x17xbf16>
    %16 = vector.extract_strided_slice %14 {offsets = [0, 0], sizes = [4, 239], strides = [1, 1]} : vector<4x256xbf16> to vector<4x239xbf16>
    %17 = tpu.concatenate %15, %16 in 1 : vector<4x17xbf16>, vector<4x239xbf16> -> vector<4x256xbf16>
    %18 = arith.andi %5, %7 : vector<1x256xi1>
    %cst = arith.constant 0.000000e+00 : bf16
    %19 = vector.broadcast %cst : bf16 to vector<4x256xbf16>
    %20 = vector.shape_cast %18 : vector<1x256xi1> to vector<1x256xi1>
    %21 = vector.broadcast %20 : vector<1x256xi1> to vector<4x256xi1>
    %22 = arith.select %21, %17, %19 : vector<4x256xi1>, vector<4x256xbf16>
    %23 = vector.extract_strided_slice %14 {offsets = [0, 240], sizes = [4, 16], strides = [1, 1]} : vector<4x256xbf16> to vector<4x16xbf16>
    %24 = vector.extract_strided_slice %14 {offsets = [0, 0], sizes = [4, 240], strides = [1, 1]} : vector<4x256xbf16> to vector<4x240xbf16>
    %25 = tpu.concatenate %23, %24 in 1 : vector<4x16xbf16>, vector<4x240xbf16> -> vector<4x256xbf16>
    %cst_5 = arith.constant 0.000000e+00 : bf16
    %26 = vector.broadcast %cst_5 : bf16 to vector<4x256xbf16>
    %27 = vector.shape_cast %5 : vector<1x256xi1> to vector<1x256xi1>
    %28 = vector.broadcast %27 : vector<1x256xi1> to vector<4x256xi1>
    %29 = arith.select %28, %25, %26 : vector<4x256xi1>, vector<4x256xbf16>
    %30 = vector.extract_strided_slice %14 {offsets = [0, 241], sizes = [4, 15], strides = [1, 1]} : vector<4x256xbf16> to vector<4x15xbf16>
    %31 = vector.extract_strided_slice %14 {offsets = [0, 0], sizes = [4, 241], strides = [1, 1]} : vector<4x256xbf16> to vector<4x241xbf16>
    %32 = tpu.concatenate %30, %31 in 1 : vector<4x15xbf16>, vector<4x241xbf16> -> vector<4x256xbf16>
    %33 = arith.andi %5, %11 : vector<1x256xi1>
    %cst_6 = arith.constant 0.000000e+00 : bf16
    %34 = vector.broadcast %cst_6 : bf16 to vector<4x256xbf16>
    %35 = vector.shape_cast %33 : vector<1x256xi1> to vector<1x256xi1>
    %36 = vector.broadcast %35 : vector<1x256xi1> to vector<4x256xi1>
    %37 = arith.select %36, %32, %34 : vector<4x256xi1>, vector<4x256xbf16>
    %38 = vector.extract_strided_slice %14 {offsets = [0, 255], sizes = [4, 1], strides = [1, 1]} : vector<4x256xbf16> to vector<4x1xbf16>
    %39 = vector.extract_strided_slice %14 {offsets = [0, 0], sizes = [4, 255], strides = [1, 1]} : vector<4x256xbf16> to vector<4x255xbf16>
    %40 = tpu.concatenate %38, %39 in 1 : vector<4x1xbf16>, vector<4x255xbf16> -> vector<4x256xbf16>
    %cst_7 = arith.constant 0.000000e+00 : bf16
    %41 = vector.broadcast %cst_7 : bf16 to vector<4x256xbf16>
    %42 = vector.shape_cast %7 : vector<1x256xi1> to vector<1x256xi1>
    %43 = vector.broadcast %42 : vector<1x256xi1> to vector<4x256xi1>
    %44 = arith.select %43, %40, %41 : vector<4x256xi1>, vector<4x256xbf16>
    %45 = vector.extract_strided_slice %14 {offsets = [0, 1], sizes = [4, 255], strides = [1, 1]} : vector<4x256xbf16> to vector<4x255xbf16>
    %46 = vector.extract_strided_slice %14 {offsets = [0, 0], sizes = [4, 1], strides = [1, 1]} : vector<4x256xbf16> to vector<4x1xbf16>
    %47 = tpu.concatenate %45, %46 in 1 : vector<4x255xbf16>, vector<4x1xbf16> -> vector<4x256xbf16>
    %cst_8 = arith.constant 0.000000e+00 : bf16
    %48 = vector.broadcast %cst_8 : bf16 to vector<4x256xbf16>
    %49 = vector.shape_cast %11 : vector<1x256xi1> to vector<1x256xi1>
    %50 = vector.broadcast %49 : vector<1x256xi1> to vector<4x256xi1>
    %51 = arith.select %50, %47, %48 : vector<4x256xi1>, vector<4x256xbf16>
    %52 = vector.extract_strided_slice %14 {offsets = [0, 15], sizes = [4, 241], strides = [1, 1]} : vector<4x256xbf16> to vector<4x241xbf16>
    %53 = vector.extract_strided_slice %14 {offsets = [0, 0], sizes = [4, 15], strides = [1, 1]} : vector<4x256xbf16> to vector<4x15xbf16>
    %54 = tpu.concatenate %52, %53 in 1 : vector<4x241xbf16>, vector<4x15xbf16> -> vector<4x256xbf16>
    %55 = arith.andi %9, %7 : vector<1x256xi1>
    %cst_9 = arith.constant 0.000000e+00 : bf16
    %56 = vector.broadcast %cst_9 : bf16 to vector<4x256xbf16>
    %57 = vector.shape_cast %55 : vector<1x256xi1> to vector<1x256xi1>
    %58 = vector.broadcast %57 : vector<1x256xi1> to vector<4x256xi1>
    %59 = arith.select %58, %54, %56 : vector<4x256xi1>, vector<4x256xbf16>
    %60 = vector.extract_strided_slice %14 {offsets = [0, 16], sizes = [4, 240], strides = [1, 1]} : vector<4x256xbf16> to vector<4x240xbf16>
    %61 = vector.extract_strided_slice %14 {offsets = [0, 0], sizes = [4, 16], strides = [1, 1]} : vector<4x256xbf16> to vector<4x16xbf16>
    %62 = tpu.concatenate %60, %61 in 1 : vector<4x240xbf16>, vector<4x16xbf16> -> vector<4x256xbf16>
    %cst_10 = arith.constant 0.000000e+00 : bf16
    %63 = vector.broadcast %cst_10 : bf16 to vector<4x256xbf16>
    %64 = vector.shape_cast %9 : vector<1x256xi1> to vector<1x256xi1>
    %65 = vector.broadcast %64 : vector<1x256xi1> to vector<4x256xi1>
    %66 = arith.select %65, %62, %63 : vector<4x256xi1>, vector<4x256xbf16>
    %67 = vector.extract_strided_slice %14 {offsets = [0, 17], sizes = [4, 239], strides = [1, 1]} : vector<4x256xbf16> to vector<4x239xbf16>
    %68 = vector.extract_strided_slice %14 {offsets = [0, 0], sizes = [4, 17], strides = [1, 1]} : vector<4x256xbf16> to vector<4x17xbf16>
    %69 = tpu.concatenate %67, %68 in 1 : vector<4x239xbf16>, vector<4x17xbf16> -> vector<4x256xbf16>
    %70 = arith.andi %9, %11 : vector<1x256xi1>
    %cst_11 = arith.constant 0.000000e+00 : bf16
    %71 = vector.broadcast %cst_11 : bf16 to vector<4x256xbf16>
    %72 = vector.shape_cast %70 : vector<1x256xi1> to vector<1x256xi1>
    %73 = vector.broadcast %72 : vector<1x256xi1> to vector<4x256xi1>
    %74 = arith.select %73, %69, %71 : vector<4x256xi1>, vector<4x256xbf16>
    %75 = tpu.concatenate %14, %22, %29, %37, %44, %51, %59, %66, %74 in 0 : vector<4x256xbf16>, vector<4x256xbf16>, vector<4x256xbf16>, vector<4x256xbf16>, vector<4x256xbf16>, vector<4x256xbf16>, vector<4x256xbf16>, vector<4x256xbf16>, vector<4x256xbf16> -> vector<36x256xbf16>
    %cst_12 = arith.constant dense<0.000000e+00> : vector<4x256xf32>
    %76 = tpu.matmul %0, %75, %cst_12 {dimension_numbers = #tpu.dot_dimension_numbers<[1], [0], [0], [1], [0, 0, 1, 1], [], []>} : vector<4x36xbf16>, vector<36x256xbf16>, vector<4x256xf32> -> vector<4x256xf32>
    %c1 = arith.constant 1 : index
    %c0_13 = arith.constant 0 : index
    %c0_14 = arith.constant 0 : index
    %77 = vector.load %arg1[%c1, %c0_13, %c0_14] : memref<2x4x256xf32, #tpu.memory_space<vmem>>, vector<1x4x256xf32>
    %78 = vector.shape_cast %77 : vector<1x4x256xf32> to vector<4x256xf32>
    %79 = arith.truncf %78 : vector<4x256xf32> to vector<4x256xbf16>
    %80 = vector.extract_strided_slice %79 {offsets = [0, 239], sizes = [4, 17], strides = [1, 1]} : vector<4x256xbf16> to vector<4x17xbf16>
    %81 = vector.extract_strided_slice %79 {offsets = [0, 0], sizes = [4, 239], strides = [1, 1]} : vector<4x256xbf16> to vector<4x239xbf16>
    %82 = tpu.concatenate %80, %81 in 1 : vector<4x17xbf16>, vector<4x239xbf16> -> vector<4x256xbf16>
    %83 = arith.andi %5, %7 : vector<1x256xi1>
    %cst_15 = arith.constant 0.000000e+00 : bf16
    %84 = vector.broadcast %cst_15 : bf16 to vector<4x256xbf16>
    %85 = vector.shape_cast %83 : vector<1x256xi1> to vector<1x256xi1>
    %86 = vector.broadcast %85 : vector<1x256xi1> to vector<4x256xi1>
    %87 = arith.select %86, %82, %84 : vector<4x256xi1>, vector<4x256xbf16>
    %88 = vector.extract_strided_slice %79 {offsets = [0, 240], sizes = [4, 16], strides = [1, 1]} : vector<4x256xbf16> to vector<4x16xbf16>
    %89 = vector.extract_strided_slice %79 {offsets = [0, 0], sizes = [4, 240], strides = [1, 1]} : vector<4x256xbf16> to vector<4x240xbf16>
    %90 = tpu.concatenate %88, %89 in 1 : vector<4x16xbf16>, vector<4x240xbf16> -> vector<4x256xbf16>
    %cst_16 = arith.constant 0.000000e+00 : bf16
    %91 = vector.broadcast %cst_16 : bf16 to vector<4x256xbf16>
    %92 = vector.shape_cast %5 : vector<1x256xi1> to vector<1x256xi1>
    %93 = vector.broadcast %92 : vector<1x256xi1> to vector<4x256xi1>
    %94 = arith.select %93, %90, %91 : vector<4x256xi1>, vector<4x256xbf16>
    %95 = vector.extract_strided_slice %79 {offsets = [0, 241], sizes = [4, 15], strides = [1, 1]} : vector<4x256xbf16> to vector<4x15xbf16>
    %96 = vector.extract_strided_slice %79 {offsets = [0, 0], sizes = [4, 241], strides = [1, 1]} : vector<4x256xbf16> to vector<4x241xbf16>
    %97 = tpu.concatenate %95, %96 in 1 : vector<4x15xbf16>, vector<4x241xbf16> -> vector<4x256xbf16>
    %98 = arith.andi %5, %11 : vector<1x256xi1>
    %cst_17 = arith.constant 0.000000e+00 : bf16
    %99 = vector.broadcast %cst_17 : bf16 to vector<4x256xbf16>
    %100 = vector.shape_cast %98 : vector<1x256xi1> to vector<1x256xi1>
    %101 = vector.broadcast %100 : vector<1x256xi1> to vector<4x256xi1>
    %102 = arith.select %101, %97, %99 : vector<4x256xi1>, vector<4x256xbf16>
    %103 = vector.extract_strided_slice %79 {offsets = [0, 255], sizes = [4, 1], strides = [1, 1]} : vector<4x256xbf16> to vector<4x1xbf16>
    %104 = vector.extract_strided_slice %79 {offsets = [0, 0], sizes = [4, 255], strides = [1, 1]} : vector<4x256xbf16> to vector<4x255xbf16>
    %105 = tpu.concatenate %103, %104 in 1 : vector<4x1xbf16>, vector<4x255xbf16> -> vector<4x256xbf16>
    %cst_18 = arith.constant 0.000000e+00 : bf16
    %106 = vector.broadcast %cst_18 : bf16 to vector<4x256xbf16>
    %107 = vector.shape_cast %7 : vector<1x256xi1> to vector<1x256xi1>
    %108 = vector.broadcast %107 : vector<1x256xi1> to vector<4x256xi1>
    %109 = arith.select %108, %105, %106 : vector<4x256xi1>, vector<4x256xbf16>
    %110 = vector.extract_strided_slice %79 {offsets = [0, 1], sizes = [4, 255], strides = [1, 1]} : vector<4x256xbf16> to vector<4x255xbf16>
    %111 = vector.extract_strided_slice %79 {offsets = [0, 0], sizes = [4, 1], strides = [1, 1]} : vector<4x256xbf16> to vector<4x1xbf16>
    %112 = tpu.concatenate %110, %111 in 1 : vector<4x255xbf16>, vector<4x1xbf16> -> vector<4x256xbf16>
    %cst_19 = arith.constant 0.000000e+00 : bf16
    %113 = vector.broadcast %cst_19 : bf16 to vector<4x256xbf16>
    %114 = vector.shape_cast %11 : vector<1x256xi1> to vector<1x256xi1>
    %115 = vector.broadcast %114 : vector<1x256xi1> to vector<4x256xi1>
    %116 = arith.select %115, %112, %113 : vector<4x256xi1>, vector<4x256xbf16>
    %117 = vector.extract_strided_slice %79 {offsets = [0, 15], sizes = [4, 241], strides = [1, 1]} : vector<4x256xbf16> to vector<4x241xbf16>
    %118 = vector.extract_strided_slice %79 {offsets = [0, 0], sizes = [4, 15], strides = [1, 1]} : vector<4x256xbf16> to vector<4x15xbf16>
    %119 = tpu.concatenate %117, %118 in 1 : vector<4x241xbf16>, vector<4x15xbf16> -> vector<4x256xbf16>
    %120 = arith.andi %9, %7 : vector<1x256xi1>
    %cst_20 = arith.constant 0.000000e+00 : bf16
    %121 = vector.broadcast %cst_20 : bf16 to vector<4x256xbf16>
    %122 = vector.shape_cast %120 : vector<1x256xi1> to vector<1x256xi1>
    %123 = vector.broadcast %122 : vector<1x256xi1> to vector<4x256xi1>
    %124 = arith.select %123, %119, %121 : vector<4x256xi1>, vector<4x256xbf16>
    %125 = vector.extract_strided_slice %79 {offsets = [0, 16], sizes = [4, 240], strides = [1, 1]} : vector<4x256xbf16> to vector<4x240xbf16>
    %126 = vector.extract_strided_slice %79 {offsets = [0, 0], sizes = [4, 16], strides = [1, 1]} : vector<4x256xbf16> to vector<4x16xbf16>
    %127 = tpu.concatenate %125, %126 in 1 : vector<4x240xbf16>, vector<4x16xbf16> -> vector<4x256xbf16>
    %cst_21 = arith.constant 0.000000e+00 : bf16
    %128 = vector.broadcast %cst_21 : bf16 to vector<4x256xbf16>
    %129 = vector.shape_cast %9 : vector<1x256xi1> to vector<1x256xi1>
    %130 = vector.broadcast %129 : vector<1x256xi1> to vector<4x256xi1>
    %131 = arith.select %130, %127, %128 : vector<4x256xi1>, vector<4x256xbf16>
    %132 = vector.extract_strided_slice %79 {offsets = [0, 17], sizes = [4, 239], strides = [1, 1]} : vector<4x256xbf16> to vector<4x239xbf16>
    %133 = vector.extract_strided_slice %79 {offsets = [0, 0], sizes = [4, 17], strides = [1, 1]} : vector<4x256xbf16> to vector<4x17xbf16>
    %134 = tpu.concatenate %132, %133 in 1 : vector<4x239xbf16>, vector<4x17xbf16> -> vector<4x256xbf16>
    %135 = arith.andi %9, %11 : vector<1x256xi1>
    %cst_22 = arith.constant 0.000000e+00 : bf16
    %136 = vector.broadcast %cst_22 : bf16 to vector<4x256xbf16>
    %137 = vector.shape_cast %135 : vector<1x256xi1> to vector<1x256xi1>
    %138 = vector.broadcast %137 : vector<1x256xi1> to vector<4x256xi1>
    %139 = arith.select %138, %134, %136 : vector<4x256xi1>, vector<4x256xbf16>
    %140 = tpu.concatenate %79, %87, %94, %102, %109, %116, %124, %131, %139 in 0 : vector<4x256xbf16>, vector<4x256xbf16>, vector<4x256xbf16>, vector<4x256xbf16>, vector<4x256xbf16>, vector<4x256xbf16>, vector<4x256xbf16>, vector<4x256xbf16>, vector<4x256xbf16> -> vector<36x256xbf16>
    %cst_23 = arith.constant dense<0.000000e+00> : vector<4x256xf32>
    %141 = tpu.matmul %0, %140, %cst_23 {dimension_numbers = #tpu.dot_dimension_numbers<[1], [0], [0], [1], [0, 0, 1, 1], [], []>} : vector<4x36xbf16>, vector<36x256xbf16>, vector<4x256xf32> -> vector<4x256xf32>
    %cst_24 = arith.constant dense<0.000000e+00> : vector<4xf32>
    %142 = vector.multi_reduction <add>, %76, %cst_24 [1] : vector<4x256xf32> to vector<4xf32>
    %143 = vector.shape_cast %142 : vector<4xf32> to vector<4x1xf32>
    %cst_25 = arith.constant dense<0.000000e+00> : vector<4xf32>
    %144 = vector.multi_reduction <add>, %141, %cst_25 [1] : vector<4x256xf32> to vector<4xf32>
    %145 = vector.shape_cast %144 : vector<4xf32> to vector<4x1xf32>
    %146 = arith.addf %143, %145 : vector<4x1xf32>
    %cst_26 = arith.constant 0.001953125 : f32
    %147 = vector.broadcast %cst_26 : f32 to vector<4x1xf32>
    %148 = arith.mulf %146, %147 : vector<4x1xf32>
    %149 = vector.broadcast %148 : vector<4x1xf32> to vector<4x256xf32>
    %150 = arith.subf %76, %149 : vector<4x256xf32>
    %151 = arith.mulf %150, %150 : vector<4x256xf32>
    %cst_27 = arith.constant dense<0.000000e+00> : vector<4xf32>
    %152 = vector.multi_reduction <add>, %151, %cst_27 [1] : vector<4x256xf32> to vector<4xf32>
    %153 = vector.shape_cast %152 : vector<4xf32> to vector<4x1xf32>
    %154 = vector.broadcast %148 : vector<4x1xf32> to vector<4x256xf32>
    %155 = arith.subf %141, %154 : vector<4x256xf32>
    %156 = arith.mulf %155, %155 : vector<4x256xf32>
    %cst_28 = arith.constant dense<0.000000e+00> : vector<4xf32>
    %157 = vector.multi_reduction <add>, %156, %cst_28 [1] : vector<4x256xf32> to vector<4xf32>
    %158 = vector.shape_cast %157 : vector<4xf32> to vector<4x1xf32>
    %159 = arith.addf %153, %158 : vector<4x1xf32>
    %cst_29 = arith.constant 0.001953125 : f32
    %160 = vector.broadcast %cst_29 : f32 to vector<4x1xf32>
    %161 = arith.mulf %159, %160 : vector<4x1xf32>
    %c0_30 = arith.constant 0 : index
    %c0_31 = arith.constant 0 : index
    %162 = vector.load %arg3[%c0_30, %c0_31] : memref<4x1xf32, #tpu.memory_space<vmem>>, vector<4x1xf32>
    %cst_32 = arith.constant 9.99999974E-6 : f32
    %163 = vector.broadcast %cst_32 : f32 to vector<4x1xf32>
    %164 = arith.addf %161, %163 : vector<4x1xf32>
    %165 = math.rsqrt %164 : vector<4x1xf32>
    %166 = arith.mulf %162, %165 : vector<4x1xf32>
    %c0_33 = arith.constant 0 : index
    %c0_34 = arith.constant 0 : index
    %167 = vector.load %arg4[%c0_33, %c0_34] : memref<4x1xf32, #tpu.memory_space<vmem>>, vector<4x1xf32>
    %168 = arith.mulf %148, %166 : vector<4x1xf32>
    %169 = arith.subf %167, %168 : vector<4x1xf32>
    %170 = vector.broadcast %166 : vector<4x1xf32> to vector<4x256xf32>
    %171 = arith.mulf %76, %170 : vector<4x256xf32>
    %172 = vector.broadcast %169 : vector<4x1xf32> to vector<4x256xf32>
    %173 = arith.addf %171, %172 : vector<4x256xf32>
    %cst_35 = arith.constant 0.000000e+00 : f32
    %174 = vector.broadcast %cst_35 : f32 to vector<4x256xf32>
    %175 = arith.maximumf %173, %174 : vector<4x256xf32>
    %c0_36 = arith.constant 0 : index
    %c0_37 = arith.constant 0 : index
    %c0_38 = arith.constant 0 : index
    %176 = vector.load %arg1[%c0_36, %c0_37, %c0_38] : memref<2x4x256xf32, #tpu.memory_space<vmem>>, vector<1x4x256xf32>
    %177 = vector.shape_cast %176 : vector<1x4x256xf32> to vector<4x256xf32>
    %178 = arith.addf %175, %177 : vector<4x256xf32>
    %cst_39 = arith.constant 0.000000e+00 : f32
    %179 = vector.broadcast %cst_39 : f32 to vector<4x256xf32>
    %180 = arith.maximumf %178, %179 : vector<4x256xf32>
    %c0_40 = arith.constant 0 : index
    %c0_41 = arith.constant 0 : index
    %c0_42 = arith.constant 0 : index
    %181 = vector.load %arg5[%c0_40, %c0_41, %c0_42] : memref<2x4x256xf32, #tpu.memory_space<vmem>>, vector<1x4x256xf32>
    %182 = vector.shape_cast %181 : vector<1x4x256xf32> to vector<4x256xf32>
    %183 = vector.shape_cast %180 : vector<4x256xf32> to vector<1x4x256xf32>
    tpu.vector_store %arg5[%c0_40, %c0_41, %c0_42], %183 {strides = array<i32>} : memref<2x4x256xf32, #tpu.memory_space<vmem>>, vector<1x4x256xf32>,
    %184 = vector.broadcast %166 : vector<4x1xf32> to vector<4x256xf32>
    %185 = arith.mulf %141, %184 : vector<4x256xf32>
    %186 = vector.broadcast %169 : vector<4x1xf32> to vector<4x256xf32>
    %187 = arith.addf %185, %186 : vector<4x256xf32>
    %cst_43 = arith.constant 0.000000e+00 : f32
    %188 = vector.broadcast %cst_43 : f32 to vector<4x256xf32>
    %189 = arith.maximumf %187, %188 : vector<4x256xf32>
    %c1_44 = arith.constant 1 : index
    %c0_45 = arith.constant 0 : index
    %c0_46 = arith.constant 0 : index
    %190 = vector.load %arg1[%c1_44, %c0_45, %c0_46] : memref<2x4x256xf32, #tpu.memory_space<vmem>>, vector<1x4x256xf32>
    %191 = vector.shape_cast %190 : vector<1x4x256xf32> to vector<4x256xf32>
    %192 = arith.addf %189, %191 : vector<4x256xf32>
    %cst_47 = arith.constant 0.000000e+00 : f32
    %193 = vector.broadcast %cst_47 : f32 to vector<4x256xf32>
    %194 = arith.maximumf %192, %193 : vector<4x256xf32>
    %c1_48 = arith.constant 1 : index
    %c0_49 = arith.constant 0 : index
    %c0_50 = arith.constant 0 : index
    %195 = vector.load %arg5[%c1_48, %c0_49, %c0_50] : memref<2x4x256xf32, #tpu.memory_space<vmem>>, vector<1x4x256xf32>
    %196 = vector.shape_cast %195 : vector<1x4x256xf32> to vector<4x256xf32>
    %197 = vector.shape_cast %194 : vector<4x256xf32> to vector<1x4x256xf32>
    tpu.vector_store %arg5[%c1_48, %c0_49, %c0_50], %197 {strides = array<i32>} : memref<2x4x256xf32, #tpu.memory_space<vmem>>, vector<1x4x256xf32>,
    return
  }
  func.func @transform_0(%arg0: i32) -> (i32, i32, i32) {
    %c0_i32 = arith.constant 0 : i32
    %c0_i32_0 = arith.constant 0 : i32
    %c0_i32_1 = arith.constant 0 : i32
    %c0_i32_2 = arith.constant 0 : i32
    return %c0_i32, %c0_i32_0, %c0_i32_1 : i32, i32, i32
  }
  func.func @transform_1(%arg0: i32) -> (i32, i32) {
    %c0_i32 = arith.constant 0 : i32
    %c0_i32_0 = arith.constant 0 : i32
    %c0_i32_1 = arith.constant 0 : i32
    return %c0_i32, %c0_i32_0 : i32, i32
  }
  func.func @transform_2(%arg0: i32) -> (i32, i32) {
    %c0_i32 = arith.constant 0 : i32
    %c0_i32_0 = arith.constant 0 : i32
    %c0_i32_1 = arith.constant 0 : i32
    return %c0_i32, %c0_i32_0 : i32, i32
  }
  func.func @transform_3(%arg0: i32) -> (i32, i32) {
    %c0_i32 = arith.constant 0 : i32
    %c0_i32_0 = arith.constant 0 : i32
    %c0_i32_1 = arith.constant 0 : i32
    return %c0_i32, %c0_i32_0 : i32, i32
  }
  func.func @transform_4(%arg0: i32) -> (i32, i32, i32) {
    %c0_i32 = arith.constant 0 : i32
    %c0_i32_0 = arith.constant 0 : i32
    %c0_i32_1 = arith.constant 0 : i32
    %c0_i32_2 = arith.constant 0 : i32
    return %c0_i32, %c0_i32_0, %c0_i32_1 : i32, i32, i32
  }
}

</mosaic_0001>

<bundles_post_ra>
// kernel: tpu_custom_call.1
= control target key start
LH: loop header
LB: loop body
LE: loop exit
PB: predicated region body
PF: predicated region fallthrough
CT: control target
= control target key end

     0   :  { %9 = vsyncpa [#allocation3], 0  ;;  %s1231_s0 = inlined_call_operand.hbm [shape: f32[2,4,256], index: 0, kind: input, shape index: {}]   ;;  %s1232_s1 = inlined_call_operand.vmem [shape: bf16[4,36], index: 1, kind: input, shape index: {}]   ;;  %s1233_s2 = inlined_call_operand.vmem [shape: f32[4,1], index: 2, kind: input, shape index: {}]   ;;  %s1234_s3 = inlined_call_operand.vmem [shape: f32[4,1], index: 3, kind: input, shape index: {}]   ;;  %s1235_s4 = inlined_call_operand.hbm [shape: f32[2,4,256], index: 4, kind: output, shape index: {}]  }
   0x1   :  { %10 = vsyncpa [#allocation4], 0  ;;  %s796_s15 = smov [#allocation2]   ;;  %s748_s19 = scalar_lea.hbm %s1231_s0, 256 }
   0x2   :  { %s16_s16 = sshll.u32 %s796_s15, 4  ;;  %p749_p0 = scmp.ne.s32.totalorder %s1231_s0, %s748_s19  ;;  %s17_s16 = int_to_ptr.vmem [resolvable:$true] %s16_s16 }
   0x3   :  { %p752_p1 = scmp.lt.u32.totalorder %s748_s19, %s1231_s0 }
   0x5   :  { %p754_p2 = pnand %p752_p1, %p749_p0 }
   0x7   :  { %757 = shalt.err (!%p754_p2)
}
   0x8   :  { %s758_s24 = scalar_lea.vmem %s17_s16, 256  ;;  %p763_p4 = scmp.lt.s32.totalorder %s17_s16, %s17_s16 }
   0x9   :  { %p759_p3 = scmp.ne.s32.totalorder %s17_s16, %s758_s24  ;;  %p764_p5 = scmp.lt.s32.totalorder %s758_s24, %s758_s24 }
   0xb   :  { %p765_p6 = por %p764_p5, %p763_p4 }
   0xd   :  { %p766_p7 = pnand %p765_p6, %p759_p3 }
   0xf   :  { %769 = shalt.err (!%p766_p7)
}
  0x10   :  { %s797_s25 = smov 128   ;;  %s798_s26 = smov 8  }
  0x11   :  { %22 = dma.hbm_to_vmem [thread:$0]  %s1231_s0, 256, %s17_s16, [#allocation3], %s797_s25, %s797_s25, %s798_s26  }
  0x12   :  { %792 = dma.done.wait [#allocation3], 256  }
  0x13   :  { %793 = vsyncadd [#allocation3], 4294967040  ;;  %v799_v0 = vmov 0   ;;  %v854_v1 = vld [vmem:[#allocation2 + $0x8] sm:$0xff]  ;;  %v856_v2 = vld [vmem:[#allocation2] sm:$0xff]  ;;  %s800_s0 = smov 17   ;;  %v36_v9 = vlaneseq }
  0x14   :  { %406 = vmatprep.mubr.bf16.mxu0 %v799_v0  ;;  %614 = vmatprep.mubr.bf16.mxu1 %v799_v0  ;;  %v860_v3 = vpack.c.bf16 %v854_v1, %v854_v1  ;;  %v864_v4 = vpack.c.bf16 %v856_v2, %v856_v2  ;;  %v868_v5 = vcombine.high %v856_v2, %v856_v2  ;;  %s801_s29 = smov 16   ;;  %s802_s30 = smov 15   ;;  %vm808_vm6 = vmmov 1  }
  0x15   :  { %742 = vset.pattern.permute.xlu1 %v799_v0  ;;  %743 = vset.pattern.permute.xlu0 %v799_v0  ;;  %v880_v7 = vcombine.high %v854_v1, %v854_v1  ;;  %s803_s5 = smov 127   ;;  %s804_s6 = smov 113   ;;  %v37_v10 = vand.u32 127, %v36_v9  ;;  %v78_v16 = vshrl.u32 %v36_v9, 7  ;;  %vm61_vm11 = vcmask 138240  }
  0x16   :  { %426 = vrot.lane.b32.xlu1 %v860_v3, %s800_s0  ;;  %59 = vrot.lane.b32.xlu0 %v864_v4, %s800_s0  ;;  %v874_v6 = vpack.c.bf16 %v868_v5, %v868_v5  ;;  %s805_s7 = smov 1   ;;  %s806_s8 = smov 112   ;;  %vm93_vm12 = vcmask 130048  }
  0x17   :  { %v886_v8 = vpack.c.bf16 %v880_v7, %v880_v7  ;;  %s807_s9 = smov 111   ;;  %v914_v11 = vadd.s32 128, %v37_v10  ;;  %v39_v12 = vand.u32 15, %v37_v10  ;;  %vm41_vm0 = vcmp.ge.s32.totalorder %v37_v10, 16 }
  0x18   :  { %vm105_vm7 = vmpackc.low %vm808_vm6, %vm41_vm0  ;;  %v936_v20 = vsub.s32 0, %v78_v16  ;;  %v938_v21 = vsub.s32 4, %v78_v16 }
  0x19   :  { %v40_v13 = vand.u32 15, %v914_v11  ;;  %vm917_vm1 = vcmp.gt.s32.totalorder %v39_v12, 0  ;;  %vm930_vm5 = vcmp.lt.s32.totalorder %v39_v12, 15  ;;  %v106_v24 = vsel %vm105_vm7, 65537, %v799_v0 }
  0x1a   :  { %91 = vrot.lane.b32.xlu1 %v864_v4, %s801_s29  ;;  %56 = vrot.lane.b32.xlu0 %v874_v6, %s800_s0  ;;  %vm69_vm3 = vmand %vm41_vm0, %vm917_vm1  ;;  %v110_v29 = vrot.slane %v106_v24, %v936_v20  ;;  %v114_v30 = vrot.slane %v106_v24, %v938_v21 }
  0x1b   :  { %vm921_vm2 = vcmp.gt.s32.totalorder %v40_v13, 0  ;;  %vm941_vm8 = vcmp.lt.s32.totalorder %v40_v13, 15  ;;  %vm131_vm9 = vmand %vm41_vm0, %vm930_vm5 }
  0x1c   :  { %vm75_vm4 = vmpackc.low %vm921_vm2, %vm69_vm3  ;;  %vm966_vm15 = vcmp.ne.s16.totalorder %v110_v29, 0  ;;  %vm970_vm0 = vcmp.ne.s16.totalorder %v114_v30, 0  ;;  %vm123_vm3 = vcmask 121856  }
  0x1d   :  { %v76_v22 = vsel %vm75_vm4, 65537, %v799_v0  ;;  %vm137_vm10 = vmpackc.low %vm941_vm8, %vm131_vm9  ;;  %vm329_vm4 = vcmask 1041408  }
  0x1e   :  { %438 = vrot.lane.b32.xlu1 %v860_v3, %s801_s29  ;;  %89 = vrot.lane.b32.xlu0 %v874_v6, %s801_s29  ;;  %v80_v26 = vrot.slane %v76_v22, %v936_v20  ;;  %v84_v27 = vrot.slane %v76_v22, %v938_v21  ;;  %v138_v31 = vsel %vm137_vm10, 65537, %v799_v0  ;;  %vm1237_vm10 = vcmask 1043456  }
  0x1f   :  { %v142_v44 = vrot.slane %v138_v31, %v936_v20  ;;  %v146_v45 = vrot.slane %v138_v31, %v938_v21 }
  0x20   :  { %vm956_vm13 = vcmp.ne.s16.totalorder %v80_v26, 0  ;;  %vm960_vm14 = vcmp.ne.s16.totalorder %v84_v27, 0 }
  0x21   :  { %vm994_vm7 = vcmp.ne.s16.totalorder %v142_v44, 0  ;;  %vm998_vm9 = vcmp.ne.s16.totalorder %v146_v45, 0 }
  0x22   :  { %423 = vrot.lane.b32.xlu1 %v886_v8, %s800_s0  ;;  %436 = vrot.lane.b32.xlu0 %v886_v8, %s801_s29 }
  0x26   :  { %121 = vrot.lane.b32.xlu1 %v864_v4, %s802_s30  ;;  %119 = vrot.lane.b32.xlu0 %v874_v6, %s802_s30 }
  0x2a   :  { %450 = vrot.lane.b32.xlu1 %v860_v3, %s802_s30  ;;  %448 = vrot.lane.b32.xlu0 %v886_v8, %s802_s30 }
  0x2e   :  { %183 = vrot.lane.b32.xlu1 %v874_v6, %s803_s5  ;;  %181 = vrot.lane.b32.xlu0 %v864_v4, %s803_s5 }
  0x32   :  { %474 = vrot.lane.b32.xlu1 %v886_v8, %s803_s5  ;;  %472 = vrot.lane.b32.xlu0 %v860_v3, %s803_s5 }
  0x36   :  { %213 = vrot.lane.b32.xlu1 %v874_v6, %s804_s6  ;;  %211 = vrot.lane.b32.xlu0 %v864_v4, %s804_s6 }
  0x3a   :  { %486 = vrot.lane.b32.xlu1 %v886_v8, %s804_s6  ;;  %484 = vrot.lane.b32.xlu0 %v860_v3, %s804_s6 }
  0x3e   :  { %153 = vrot.lane.b32.xlu1 %v864_v4, %s805_s7  ;;  %151 = vrot.lane.b32.xlu0 %v874_v6, %s805_s7 }
  0x42   :  { %245 = vrot.lane.b32.xlu1 %v874_v6, %s806_s8  ;;  %243 = vrot.lane.b32.xlu0 %v864_v4, %s806_s8 }
  0x46   :  { %462 = vrot.lane.b32.xlu1 %v860_v3, %s805_s7  ;;  %460 = vrot.lane.b32.xlu0 %v886_v8, %s805_s7 }
  0x4a   :  { %498 = vrot.lane.b32.xlu1 %v886_v8, %s806_s8  ;;  %496 = vrot.lane.b32.xlu0 %v860_v3, %s806_s8 }
  0x4e   :  { %275 = vrot.lane.b32.xlu1 %v874_v6, %s807_s9  ;;  %273 = vrot.lane.b32.xlu0 %v864_v4, %s807_s9 }
  0x52   :  { %510 = vrot.lane.b32.xlu1 %v886_v8, %s807_s9  ;;  %508 = vrot.lane.b32.xlu0 %v860_v3, %s807_s9 }
  0x88   :  { %v427_v18 = vpop.permute.xlu1 %426  ;;  %v60_v19 = vpop.permute.xlu0 %59 }
  0x8c   :  { %v92_v25 = vpop.permute.xlu1 %91  ;;  %v57_v28 = vpop.permute.xlu0 %56 }
  0x8d   :  { %v62_v34 = vsel %vm61_vm11, %v60_v19, %v57_v28  ;;  %v67_v35 = vsel %vm61_vm11, %v57_v28, %v60_v19 }
  0x8e   :  { %v87_v42 = vsel %vm956_vm13, %v67_v35, 0  ;;  %v88_v43 = vsel %vm960_vm14, %v62_v34, 0 }
  0x8f   :  { %v307_v54 = vrot.slane %v87_v42, 6  ;;  %v308_v55 = vrot.slane %v88_v43, 6 }
  0x90   :  { %v439_v36 = vpop.permute.xlu1 %438  ;;  %v90_v37 = vpop.permute.xlu0 %89 }
  0x91   :  { %v94_v40 = vsel %vm93_vm12, %v92_v25, %v90_v37  ;;  %v99_v41 = vsel %vm93_vm12, %v90_v37, %v92_v25  ;;  %v335_v24 = vsel %vm329_vm4, %v874_v6, %v308_v55  ;;  %v332_v25 = vsel %vm329_vm4, %v864_v4, %v307_v54 }
  0x92   :  { %v117_v46 = vsel %vm966_vm15, %v99_v41, 0  ;;  %v118_v47 = vsel %vm970_vm0, %v94_v40, 0 }
  0x93   :  { %v311_v58 = vrot.slane %v117_v46, 4  ;;  %v312_v59 = vrot.slane %v118_v47, 4 }
  0x94   :  { %v424_v48 = vpop.permute.xlu1 %423  ;;  %v437_v49 = vpop.permute.xlu0 %436 }
  0x95   :  { %v428_v50 = vsel %vm61_vm11, %v427_v18, %v424_v48  ;;  %v432_v51 = vsel %vm61_vm11, %v424_v48, %v427_v18  ;;  %v440_v52 = vsel %vm93_vm12, %v439_v36, %v437_v49  ;;  %v444_v53 = vsel %vm93_vm12, %v437_v49, %v439_v36 }
  0x96   :  { %v434_v56 = vsel %vm956_vm13, %v432_v51, 0  ;;  %v435_v57 = vsel %vm960_vm14, %v428_v50, 0  ;;  %v446_v9 = vsel %vm966_vm15, %v444_v53, 0  ;;  %v447_v10 = vsel %vm970_vm0, %v440_v52, 0  ;;  %vm197_vm14 = vmpackc.low %vm941_vm8, %vm930_vm5 }
  0x97   :  { %v522_v62 = vrot.slane %v434_v56, 6  ;;  %v523_v63 = vrot.slane %v435_v57, 6  ;;  %vm1236_vm11 = vcmask 1045504   ;;  %v526_v26 = vrot.slane %v446_v9, 4  ;;  %vm167_vm0 = vmpackc.low %vm921_vm2, %vm917_vm1 }
  0x98   :  { %v122_v12 = vpop.permute.xlu1 %121  ;;  %v120_v13 = vpop.permute.xlu0 %119  ;;  %v527_v27 = vrot.slane %v447_v10, 4  ;;  %v340_v32 = vsel %vm1237_vm10, %v335_v24, %v312_v59  ;;  %v338_v33 = vsel %vm1237_vm10, %v332_v25, %v311_v58  ;;  %vm46_vm12 = vcmp.lt.s32.totalorder %v914_v11, 240 }
  0x99   :  { %v124_v16 = vsel %vm123_vm3, %v122_v12, %v120_v13  ;;  %v129_v18 = vsel %vm123_vm3, %v120_v13, %v122_v12  ;;  %v549_v34 = vsel %vm329_vm4, %v886_v8, %v523_v63  ;;  %v546_v35 = vsel %vm329_vm4, %v860_v3, %v522_v62  ;;  %vm224_vm13 = vmand %vm46_vm12, %vm921_vm2 }
  0x9a   :  { %v149_v19 = vsel %vm994_vm7, %v129_v18, 0  ;;  %v150_v22 = vsel %vm998_vm9, %v124_v16, 0  ;;  %v553_v42 = vsel %vm1237_vm10, %v549_v34, %v527_v27  ;;  %v551_v43 = vsel %vm1237_vm10, %v546_v35, %v526_v26  ;;  %vm229_vm15 = vmpackc.low %vm224_vm13, %vm917_vm1 }
  0x9b   :  { %v315_v28 = vrot.slane %v149_v19, 2  ;;  %v316_v29 = vrot.slane %v150_v22, 2  ;;  %v198_v48 = vsel %vm197_vm14, 65537, %v799_v0  ;;  %v230_v49 = vsel %vm229_vm15, 65537, %v799_v0  ;;  %vm1078_vm13 = vmand %vm46_vm12, %vm941_vm8 }
  0x9c   :  { %v451_v30 = vpop.permute.xlu1 %450  ;;  %v449_v31 = vpop.permute.xlu0 %448  ;;  %v202_v50 = vrot.slane %v198_v48, %v936_v20  ;;  %v168_v53 = vsel %vm167_vm0, 65537, %v799_v0  ;;  %v206_v54 = vrot.slane %v198_v48, %v938_v21  ;;  %v234_v14 = vrot.slane %v230_v49, %v936_v20 }
  0x9d   :  { %v452_v6 = vsel %vm123_vm3, %v451_v30, %v449_v31  ;;  %v456_v4 = vsel %vm123_vm3, %v449_v31, %v451_v30  ;;  %v346_v36 = vsel %vm1236_vm11, %v340_v32, %v316_v29  ;;  %v343_v37 = vsel %vm1236_vm11, %v338_v33, %v315_v28  ;;  %vm259_vm3 = vmpackc.low %vm46_vm12, %vm808_vm6 }
  0x9e   :  { %v458_v38 = vsel %vm994_vm7, %v456_v4, 0  ;;  %v459_v39 = vsel %vm998_vm9, %v452_v6, 0  ;;  %374 = vmatprep.subr.bf16.mxu0 %v346_v36  ;;  %vm185_vm7 = vcmask 1039360   ;;  %v238_v15 = vrot.slane %v230_v49, %v938_v21  ;;  %vm291_vm12 = vmpackc.low %vm1078_vm13, %vm930_vm5 }
  0x9f   :  { %v530_v8 = vrot.slane %v458_v38, 2  ;;  %v531_v40 = vrot.slane %v459_v39, 2  ;;  %375 = vmatpush1.bf16.msra.mxu0 %v343_v37  ;;  %v172_v55 = vrot.slane %v168_v53, %v936_v20  ;;  %v176_v56 = vrot.slane %v168_v53, %v938_v21 }
  0xa0   :  { %v184_v3 = vpop.permute.xlu1 %183  ;;  %v182_v41 = vpop.permute.xlu0 %181  ;;  %v260_v57 = vsel %vm259_vm3, 65537, %v799_v0  ;;  %vm1062_vm1 = vcmp.ne.s16.totalorder %v202_v50, 0  ;;  %vm1066_vm2 = vcmp.ne.s16.totalorder %v206_v54, 0  ;;  %vm215_vm6 = vcmask 924672  }
  0xa1   :  { %v558_v44 = vsel %vm1236_vm11, %v553_v42, %v531_v40  ;;  %v555_v45 = vsel %vm1236_vm11, %v551_v43, %v530_v8  ;;  %v186_v62 = vsel %vm185_vm7, %v182_v41, %v184_v3  ;;  %v191_v63 = vsel %vm185_vm7, %v184_v3, %v182_v41 }
  0xa2   :  { %582 = vmatprep.subr.bf16.mxu1 %v558_v44  ;;  %vm155_vm9 = vcmask 7168   ;;  %v264_v9 = vrot.slane %v260_v57, %v936_v20  ;;  %v268_v10 = vrot.slane %v260_v57, %v938_v21  ;;  %vm1082_vm14 = vcmp.ne.s16.totalorder %v234_v14, 0 }
  0xa3   :  { %583 = vmatpush1.bf16.msra.mxu1 %v555_v45  ;;  %vm1086_vm15 = vcmp.ne.s16.totalorder %v238_v15, 0  ;;  %vm1090_vm0 = vcmp.ne.s16.totalorder %v172_v55, 0  ;;  %vm1094_vm3 = vcmp.ne.s16.totalorder %v176_v56, 0  ;;  %v209_v11 = vsel %vm1062_vm1, %v186_v62, 0 }
  0xa4   :  { %v475_v46 = vpop.permute.xlu1 %474  ;;  %v473_v47 = vpop.permute.xlu0 %472  ;;  %v210_v19 = vsel %vm1066_vm2, %v191_v63, 0  ;;  %vm247_vm8 = vcmask 916480   ;;  %vm1114_vm11 = vcmp.ne.s16.totalorder %v264_v9, 0  ;;  %vm1118_vm10 = vcmp.ne.s16.totalorder %v268_v10, 0 }
  0xa5   :  { %v319_v33 = vrot.slane %v209_v11, 6  ;;  %v320_v34 = vrot.slane %v210_v19, 6  ;;  %v476_v6 = vsel %vm185_vm7, %v473_v47, %v475_v46  ;;  %v480_v4 = vsel %vm185_vm7, %v475_v46, %v473_v47 }
  0xa6   :  { %v292_v38 = vsel %vm291_vm12, 65537, %v799_v0  ;;  %v482_v45 = vsel %vm1062_vm1, %v476_v6, 0  ;;  %v483_v0 = vsel %vm1066_vm2, %v480_v4, 0  ;;  %vm1276_vm5 = vcmask 1043456  }
  0xa7   :  { %vm1277_vm7 = vmmov %vm1276_vm5  ;;  %vm1278_vm1 = vcmask 1045504   ;;  %v300_v58 = vrot.slane %v292_v38, %v938_v21  ;;  %v535_v61 = vrot.slane %v483_v0, 6  ;;  %vm277_vm2 = vcmask 908288  }
  0xa8   :  { %v214_v51 = vpop.permute.xlu1 %213  ;;  %v212_v52 = vpop.permute.xlu0 %211  ;;  %vm1279_vm13 = vmmov %vm1278_vm1 }
  0xa9   :  { %v216_v22 = vsel %vm215_vm6, %v212_v52, %v214_v51  ;;  %v221_v24 = vsel %vm215_vm6, %v214_v51, %v212_v52 }
  0xaa   :  { %v241_v17 = vsel %vm1082_vm14, %v216_v22, 0  ;;  %v242_v35 = vsel %vm1086_vm15, %v221_v24, 0 }
  0xab   :  { %v323_v41 = vrot.slane %v241_v17, 4  ;;  %v324_v42 = vrot.slane %v242_v35, 4 }
  0xac   :  { %v487_v59 = vpop.permute.xlu1 %486  ;;  %v485_v60 = vpop.permute.xlu0 %484 }
  0xad   :  { %v488_v48 = vsel %vm215_vm6, %v485_v60, %v487_v59  ;;  %v492_v49 = vsel %vm215_vm6, %v487_v59, %v485_v60  ;;  %v296_v59 = vrot.slane %v292_v38, %v936_v20  ;;  %v534_v60 = vrot.slane %v482_v45, 6 }
  0xae   :  { %v494_v62 = vsel %vm1082_vm14, %v488_v48, 0  ;;  %v495_v63 = vsel %vm1086_vm15, %v492_v49, 0  ;;  %vm1167_vm6 = vcmp.ne.s16.totalorder %v300_v58, 0  ;;  %vm1284_vm14 = vmmov %vm1276_vm5 }
  0xaf   :  { %v538_v23 = vrot.slane %v494_v62, 4  ;;  %v539_v11 = vrot.slane %v495_v63, 4  ;;  %vm1285_vm15 = vmmov %vm1276_vm5 }
  0xb0   :  { %v154_v25 = vpop.permute.xlu1 %153  ;;  %v152_v26 = vpop.permute.xlu0 %151 }
  0xb1   :  { %v156_v27 = vsel %vm155_vm9, %v154_v25, %v152_v26  ;;  %v161_v28 = vsel %vm155_vm9, %v152_v26, %v154_v25  ;;  %v659_v25 = vld [vmem:[%s1234_s3] sm:$0xf] }
  0xb2   :  { %v179_v29 = vsel %vm1090_vm0, %v161_v28, 0  ;;  %v180_v30 = vsel %vm1094_vm3, %v156_v27, 0 }
  0xb3   :  { %v350_v39 = vsel %vm329_vm4, %v179_v29, %v319_v33  ;;  %v353_v8 = vsel %vm329_vm4, %v180_v30, %v320_v34 }
  0xb4   :  { %v246_v36 = vpop.permute.xlu1 %245  ;;  %v244_v37 = vpop.permute.xlu0 %243  ;;  %v357_v52 = vsel %vm1276_vm5, %v353_v8, %v324_v42  ;;  %v355_v53 = vsel %vm1277_vm7, %v350_v39, %v323_v41 }
  0xb5   :  { %v248_v40 = vsel %vm247_vm8, %v244_v37, %v246_v36  ;;  %v253_v3 = vsel %vm247_vm8, %v246_v36, %v244_v37  ;;  %v35_v36 = vld [vmem:[%s1232_s1] sm:$0x3] }
  0xb6   :  { %v271_v43 = vsel %vm1114_vm11, %v248_v40, 0  ;;  %v272_v44 = vsel %vm1118_vm10, %v253_v3, 0 }
  0xb7   :  { %v327_v46 = vrot.slane %v271_v43, 2  ;;  %v328_v47 = vrot.slane %v272_v44, 2 }
  0xb8   :  { %v463_v50 = vpop.permute.xlu1 %462  ;;  %v461_v51 = vpop.permute.xlu0 %460 }
  0xb9   :  { %v464_v54 = vsel %vm155_vm9, %v463_v50, %v461_v51  ;;  %v468_v14 = vsel %vm155_vm9, %v461_v51, %v463_v50  ;;  %v362_v15 = vsel %vm1278_vm1, %v357_v52, %v328_v47  ;;  %v359_v55 = vsel %vm1279_vm13, %v355_v53, %v327_v46 }
  0xba   :  { %v470_v56 = vsel %vm1090_vm0, %v468_v14, 0  ;;  %v471_v57 = vsel %vm1094_vm3, %v464_v54, 0  ;;  %376 = vmatprep.subr.bf16.mxu0 %v362_v15  ;;  %vm1171_vm9 = vcmp.ne.s16.totalorder %v296_v59, 0  ;;  %vm364_vm0 = vcmask 293888   ;;  %vm1288_vm3 = vmmov %vm1276_vm5 }
  0xbb   :  { %377 = vmatpush1.bf16.msra.mxu0 %v359_v55  ;;  %v562_v12 = vsel %vm329_vm4, %v470_v56, %v534_v60  ;;  %v565_v18 = vsel %vm329_vm4, %v471_v57, %v535_v61  ;;  %vm1290_vm12 = vmmov %vm1288_vm3 }
  0xbc   :  { %v499_v9 = vpop.permute.xlu1 %498  ;;  %v497_v10 = vpop.permute.xlu0 %496  ;;  %v569_v28 = vsel %vm1284_vm14, %v565_v18, %v539_v11  ;;  %v567_v29 = vsel %vm1285_vm15, %v562_v12, %v538_v23  ;;  %vm1291_vm5 = vmmov %vm1288_vm3 }
  0xbd   :  { %v500_v21 = vsel %vm247_vm8, %v497_v10, %v499_v9  ;;  %v504_v20 = vsel %vm247_vm8, %v499_v9, %v497_v10  ;;  %vm1289_vm8 = vmmov %vm1288_vm3 }
  0xbe   :  { %v506_v13 = vsel %vm1114_vm11, %v500_v21, 0  ;;  %v507_v16 = vsel %vm1118_vm10, %v504_v20, 0  ;;  %vm1286_vm10 = vmmov %vm1278_vm1 }
  0xbf   :  { %v542_v19 = vrot.slane %v506_v13, 2  ;;  %v543_v22 = vrot.slane %v507_v16, 2  ;;  %vm1287_vm11 = vmmov %vm1278_vm1 }
  0xc0   :  { %v276_v26 = vpop.permute.xlu1 %275  ;;  %v274_v27 = vpop.permute.xlu0 %273  ;;  %vm1293_vm7 = vmmov %vm1288_vm3 }
  0xc1   :  { %v278_v30 = vsel %vm277_vm2, %v274_v27, %v276_v26  ;;  %v283_v31 = vsel %vm277_vm2, %v276_v26, %v274_v27  ;;  %v574_v32 = vsel %vm1286_vm10, %v569_v28, %v543_v22  ;;  %v571_v33 = vsel %vm1287_vm11, %v567_v29, %v542_v19  ;;  %vm1294_vm1 = vmmov %vm1288_vm3  ;;  %v655_v19 = vld [vmem:[%s1233_s2] sm:$0xf]  ;;  %s809_s2 = smov [#allocation5]  }
  0xc2   :  { %v304_v34 = vsel %vm1167_vm6, %v283_v31, 0  ;;  %584 = vmatprep.subr.bf16.mxu1 %v574_v32  ;;  %v303_v17 = vsel %vm1171_vm9, %v278_v30, 0  ;;  %vm1295_vm13 = vmmov %vm1294_vm1  ;;  %s712_s3 = sshll.u32 %s809_s2, 4  ;;  %s713_s3 = int_to_ptr.vmem [resolvable:$true] %s712_s3 }
  0xc3   :  { %724 = vmatprep.subr.msk.bf16.mxu0 %vm329_vm4, %v304_v34  ;;  %585 = vmatpush1.bf16.msra.mxu1 %v571_v33  ;;  %v369_v35 = vsel %vm329_vm4, %v303_v17, 0  ;;  %s770_s15 = scalar_lea.vmem %s713_s3, 256  ;;  %p775_p9 = scmp.lt.s32.totalorder %s713_s3, %s713_s3 }
  0xc4   :  { %v511_v6 = vpop.permute.xlu1 %510  ;;  %379 = vmatpush1.bf16.msra.mxu0 %v369_v35  ;;  %v509_v4 = vpop.permute.xlu0 %508  ;;  %p771_p8 = scmp.ne.s32.totalorder %s713_s3, %s770_s15  ;;  %p776_p10 = scmp.lt.s32.totalorder %s770_s15, %s770_s15 }
  0xc5   :  { %v512_v37 = vsel %vm277_vm2, %v509_v4, %v511_v6  ;;  %v516_v38 = vsel %vm277_vm2, %v511_v6, %v509_v4 }
  0xc6   :  { %v519_v39 = vsel %vm1167_vm6, %v516_v38, 0  ;;  %v518_v8 = vsel %vm1171_vm9, %v512_v37, 0  ;;  %p777_p11 = por %p776_p10, %p775_p9 }
  0xc7   :  { %726 = vmatprep.subr.msk.bf16.mxu1 %vm329_vm4, %v519_v39  ;;  %725 = vmatmul.mubr.msk.bf16.vlgmr.msra.gmra.mrb[0].mxu0 %vm364_vm0, %v35_v36  ;;  %v577_v40 = vsel %vm329_vm4, %v518_v8, 0  ;;  %vm1292_vm4 = vmmov %vm1288_vm3 }
  0xc8   :  { %587 = vmatpush1.bf16.msra.mxu1 %v577_v40  ;;  %p778_p12 = pnand %p777_p11, %p771_p8 }
  0xcb   :  { %727 = vmatmul.mubr.msk.bf16.vlgmr.msra.gmra.mrb[0].mxu1 %vm364_vm0, %v35_v36 }
 0x19a   :  { %v408_v3 = vpop.f32.mrb[0].mxu0 }
 0x19b   :  { %v410_v41 = vpop.f32.mrb[1].mxu0  ;;  %v623_v42 = vsel %vm1288_vm3, %v408_v3, 0.0 }
 0x19c   :  { %v412_v43 = vpop.f32.mrb[2].mxu0  ;;  %v624_v44 = vsel %vm1289_vm8, %v410_v41, 0.0 }
 0x19d   :  { %v413_v45 = vpop.f32.mrb[3].mxu0  ;;  %v625_v0 = vadd.f32 %v624_v44, %v623_v42 }
 0x19e   :  { %v616_v46 = vpop.f32.mrb[0].mxu1 }
 0x19f   :  { %v618_v47 = vpop.f32.mrb[1].mxu1  ;;  %626 = vadd.xlane.f32.xlu0 %v625_v0  ;;  %v628_v48 = vsel %vm1290_vm12, %v616_v46, 0.0 }
 0x1a0   :  { %v620_v49 = vpop.f32.mrb[2].mxu1  ;;  %v629_v50 = vsel %vm1291_vm5, %v618_v47, 0.0 }
 0x1a1   :  { %v621_v51 = vpop.f32.mrb[3].mxu1  ;;  %v630_v52 = vadd.f32 %v629_v50, %v628_v48 }
 0x1a3   :  { %631 = vadd.xlane.f32.xlu1 %v630_v52 }
 0x22c   :  { %v627_v53 = vpop.xlane.xlu0 %626 }
 0x230   :  { %v632_v54 = vpop.xlane.xlu1 %631 }
 0x231   :  { %v633_v14 = vadd.f32 %v632_v54, %v627_v53 }
 0x233   :  { %v634_v15 = vmul.f32 0.001953125, %v633_v14 }
 0x235   :  { %v635_v55 = vsub.f32 %v408_v3, %v634_v15  ;;  %v636_v56 = vsub.f32 %v410_v41, %v634_v15  ;;  %v644_v57 = vsub.f32 %v616_v46, %v634_v15  ;;  %v645_v58 = vsub.f32 %v618_v47, %v634_v15 }
 0x237   :  { %v637_v59 = vmul.f32 %v635_v55, %v635_v55  ;;  %v638_v60 = vmul.f32 %v636_v56, %v636_v56  ;;  %v646_v61 = vmul.f32 %v644_v57, %v644_v57  ;;  %v647_v62 = vmul.f32 %v645_v58, %v645_v58 }
 0x239   :  { %v639_v63 = vsel %vm1292_vm4, %v637_v59, 0.0  ;;  %v640_v9 = vsel %vm1293_vm7, %v638_v60, 0.0  ;;  %v648_v10 = vsel %vm1294_vm1, %v646_v61, 0.0  ;;  %v649_v12 = vsel %vm1295_vm13, %v647_v62, 0.0 }
 0x23a   :  { %v641_v18 = vadd.f32 %v640_v9, %v639_v63  ;;  %v650_v21 = vadd.f32 %v649_v12, %v648_v10 }
 0x23c   :  { %642 = vadd.xlane.f32.xlu0 %v641_v18 }
 0x240   :  { %651 = vadd.xlane.f32.xlu0 %v650_v21 }
 0x2c9   :  { %v643_v20 = vpop.xlane.xlu0 %642 }
 0x2cd   :  { %v652_v23 = vpop.xlane.xlu0 %651 }
 0x2ce   :  { %v653_v11 = vadd.f32 %v652_v23, %v643_v20 }
 0x2d0   :  { %v654_v13 = vmul.f32 0.001953125, %v653_v11 }
 0x2d2   :  { %v656_v16 = vadd.f32 1e-05, %v654_v13 }
 0x2d4   :  { %746 = vrsqrt.f32 %v656_v16 }
 0x2de   :  { %v747_v22 = vpop.eup %746 }
 0x2df   :  { %v658_v24 = vmul.f32 %v747_v22, %v655_v19 }
 0x2e1   :  { %664 = vperm.xlu1 %742, %v658_v24   ;;  %v660_v26 = vmul.f32 %v658_v24, %v634_v15 }
 0x2e3   :  { %v661_v27 = vsub.f32 %v659_v25, %v660_v26 }
 0x2e5   :  { %671 = vperm.xlu0 %743, %v661_v27  }
 0x360   :  { %v665_v28 = vpop.permute.xlu1 %664 }
 0x361   :  { %v667_v29 = vmul.f32 %v665_v28, %v408_v3  ;;  %v668_v30 = vmul.f32 %v665_v28, %v410_v41  ;;  %v687_v31 = vmul.f32 %v665_v28, %v616_v46  ;;  %v688_v32 = vmul.f32 %v665_v28, %v618_v47 }
 0x364   :  { %v672_v33 = vpop.permute.xlu0 %671 }
 0x365   :  { %v674_v34 = vadd.f32 %v672_v33, %v667_v29  ;;  %v675_v17 = vadd.f32 %v672_v33, %v668_v30  ;;  %v689_v35 = vadd.f32 %v687_v31, %v672_v33  ;;  %v690_v6 = vadd.f32 %v688_v32, %v672_v33 }
 0x367   :  { %v676_v4 = vmax.f32 %v674_v34, 0.0  ;;  %v677_v36 = vmax.f32 %v675_v17, 0.0  ;;  %v691_v37 = vmax.f32 %v689_v35, 0.0  ;;  %v692_v38 = vmax.f32 %v690_v6, 0.0 }
 0x369   :  { %v678_v39 = vadd.f32 %v676_v4, %v856_v2  ;;  %v679_v8 = vadd.f32 %v677_v36, %v868_v5  ;;  %v697_v40 = vadd.f32 %v691_v37, %v854_v1  ;;  %v698_v3 = vadd.f32 %v692_v38, %v880_v7 }
 0x36b   :  { %v680_v41 = vmax.f32 %v678_v39, 0.0  ;;  %v681_v42 = vmax.f32 %v679_v8, 0.0  ;;  %v699_v43 = vmax.f32 %v697_v40, 0.0  ;;  %v700_v44 = vmax.f32 %v698_v3, 0.0 }
 0x36d   :  { %v684_v45 = vcombine.low %v680_v41, %v681_v42  ;;  %v703_v0 = vcombine.low %v699_v43, %v700_v44 }
 0x36f   :  { %686 = vst [vmem:[#allocation5] sm:$0xff] %v684_v45  ;;  %706 = vst [vmem:[#allocation5 + $0x8] sm:$0xff] %v703_v0 }
 0x370   :  { %781 = shalt.err (!%p778_p12)
}
 0x371   :  { %s782_s18 = scalar_lea.hbm %s1235_s4, 256 }
 0x372   :  { %p783_p13 = scmp.ne.s32.totalorder %s1235_s4, %s782_s18  ;;  %p786_p0 = scmp.lt.u32.totalorder %s782_s18, %s1235_s4 }
 0x374   :  { %p788_p1 = pnand %p786_p0, %p783_p13 }
 0x376   :  { %791 = shalt.err (!%p788_p1)
}
 0x377   :  { %718 = dma.vmem_to_hbm [thread:$0]  %s713_s3, 256, %s1235_s4, [#allocation4], %s797_s25, %s797_s25, %s798_s26  }
 0x378   :  { %794 = dma.done.wait [#allocation4], 256  }
 0x379   :  { %795 = vsyncadd [#allocation4], 4294967040 }
 0x37a   :  { %722 = vsyncpa [#allocation3], 1 }
 0x37b   :  { %723 = vsyncpa [#allocation4], 1 }

</bundles_post_ra>
